<compile_context>
chip_gen: v7x
topology: tpu7x:2x2x1
jax: 0.10.0
libtpu: 0.0.40
codegen_flags: <defaults>
</compile_context>

<pallas_src>
import math

import jax
import jax.numpy as jnp
from jax.experimental import pallas as pl
from jax.experimental.pallas import tpu as pltpu


def _layer_scale_kernel(x_ref, g_ref, o_ref):
    # x_ref: (tile_rows, L) tile; g_ref: (1, L) resident gamma lanes.
    # Promote to the output dtype in-register (matches torch promotion when
    # promote_dtype=True; identity cast otherwise).
    o_ref[...] = x_ref[...].astype(o_ref.dtype) * g_ref[...]


def _sublane(dtype) -> int:
    # Sublane packing: 8 rows for 32-bit, 16 for 16-bit, 32 for 8-bit dtypes.
    return 8 * max(1, 4 // jnp.dtype(dtype).itemsize)


def _vmem_capacity_bytes() -> int:
    # Per-chip VMEM (v5e/v6e: 128 MiB, v7x: 64 MiB). Conservative fallback.
    try:
        info = pltpu.get_tpu_info()
        return int(getattr(info, "vmem_capacity_bytes", 64 << 20))
    except Exception:  # pragma: no cover - defensive
        return 64 << 20


def layer_scale(x: jax.Array, gamma: jax.Array, *, promote_dtype: bool = True,
                allow_inplace: bool = True) -> jax.Array:
    """LayerScale forward: x * gamma, gamma broadcast over the last axis.

    promote_dtype=True matches torch/jnp type promotion (bf16 x * f32 gamma ->
    f32 out); promote_dtype=False keeps x.dtype (confirm with model owner).
    """
    orig_shape = x.shape
    D = orig_shape[-1]
    assert gamma.shape == (D,), f"gamma must be ({D},), got {gamma.shape}"
    out_dtype = jnp.promote_types(x.dtype, gamma.dtype) if promote_dtype else x.dtype

    total = x.size

    # --- Lane-dense layout ---------------------------------------------------
    # Keep the kernel's last dim a multiple of 128 lanes. If D isn't, fold
    # consecutive D-rows into an L = lcm(D, 128) lane axis and tile gamma to
    # match. Any leftover (< L elements) is handled by a plain XLA multiply so
    # the kernel never falls back to sub-128-lane masked stores.
    L = D if D % 128 == 0 else math.lcm(D, 128)
    n_main = (total // L) * L
    if n_main == 0:
        # Array smaller than one lane-dense row: run the kernel at L = D
        # (masked edge stores, negligible traffic at this size).
        L = D
        n_main = total

    x_flat = x.reshape(-1)
    x_main = x_flat[:n_main] if n_main < total else x_flat
    R = n_main // L
    x2 = x_main.reshape(R, L)
    g2 = jnp.tile(gamma, L // D).reshape(1, L).astype(out_dtype)

    # --- Row-chunk tiling ----------------------------------------------------
    itm_x = jnp.dtype(x.dtype).itemsize
    itm_o = jnp.dtype(out_dtype).itemsize
    sub = _sublane(x.dtype)

    vmem_cap = _vmem_capacity_bytes()
    # Budget for the double-buffered in+out pipeline tiles.
    pipe_budget = (48 << 20) if vmem_cap >= (100 << 20) else (16 << 20)
    bytes_per_row = 2 * (itm_x + itm_o) * L  # 2x = double buffering
    target_rows = max(sub, (pipe_budget // bytes_per_row) // sub * sub)

    if R <= sub:
        tile_rows = R  # tiny array: single full-extent block is always legal
    else:
        tile_rows = min(target_rows, (R // sub) * sub)
        # Guarantee >= 2 blocks so both v7x TensorCores get work on the
        # "parallel" axis: cap at ceil(R/2) rounded to the sublane.
        half_cap = max(sub, (-(-R // 2) // sub) * sub)
        if half_cap < R:
            tile_rows = min(tile_rows, half_cap)
        tile_rows = max(sub, tile_rows)
        # Prefer a tile that divides R (unmasked full-tile DMA/store on every
        # grid step). Bounded trace-time search; keep tiles >= half the target.
        if R % tile_rows != 0:
            t, steps = tile_rows, 0
            while t > sub and steps < 64 and R % t != 0:
                t -= sub
                steps += 1
            if R % t == 0 and t >= max(sub, tile_rows // 2):
                tile_rows = t

    grid = (pl.cdiv(R, tile_rows),)

    # Double-buffered input + output tiles, resident gamma, plus headroom;
    # never ask for more than 3/4 of physical VMEM.
    vmem_bytes = 2 * tile_rows * L * (itm_x + itm_o) + 2 * L * itm_o + (2 << 20)
    vmem_bytes = int(min(max(vmem_bytes, 8 << 20), (vmem_cap * 3) // 4))

    extra_kwargs = {}
    if allow_inplace and out_dtype == jnp.dtype(x.dtype):
        # Same shape & dtype: let the output reuse x's HBM buffer (XLA inserts
        # a copy if the value is still live, so this is always safe).
        extra_kwargs["input_output_aliases"] = {0: 0}

    out2 = pl.pallas_call(
        _layer_scale_kernel,
        out_shape=jax.ShapeDtypeStruct((R, L), out_dtype),
        grid=grid,
        in_specs=[
            pl.BlockSpec((tile_rows, L), lambda i: (i, 0)),
            pl.BlockSpec((1, L), lambda i: (0, 0)),  # gamma: constant -> resident
        ],
        out_specs=pl.BlockSpec((tile_rows, L), lambda i: (i, 0)),
        compiler_params=pltpu.CompilerParams(
            dimension_semantics=("parallel",),
            vmem_limit_bytes=vmem_bytes,
        ),
        **extra_kwargs,
    )(x2, g2)

    if n_main < total:
        # Tail (< L elements, still a whole number of D-rows): plain XLA mul.
        x_tail = x_flat[n_main:].reshape(-1, D)
        tail_out = (x_tail.astype(out_dtype) * gamma.astype(out_dtype)).reshape(-1)
        out_flat = jnp.concatenate([out2.reshape(-1), tail_out])
        return out_flat.reshape(orig_shape)
    return out2.reshape(orig_shape)


if __name__ == "__main__":
    key = jax.random.PRNGKey(0)
    init_values = 1e-5

    # Case 1: module-implied small shape (batch=2, seq=8, hidden=32), f32.
    B, N, D = 2, 8, 32
    x = jax.random.normal(key, (B, N, D), dtype=jnp.float32)
    gamma = init_values * jnp.ones((D,), dtype=jnp.float32)
    ref = x * gamma
    out = layer_scale(x, gamma)
    jax.block_until_ready(out)
    assert out.shape == x.shape and out.dtype == ref.dtype
    assert jnp.allclose(out, ref, atol=1e-6, rtol=1e-6)

    # Case 2: lane-dense-native path (D multiple of 128), multi-block grid.
    B2, N2, D2 = 2, 8, 128
    x2 = jax.random.normal(jax.random.PRNGKey(1), (B2, N2, D2), dtype=jnp.float32)
    gamma2 = init_values * jnp.ones((D2,), dtype=jnp.float32)
    ref2 = x2 * gamma2
    out2 = layer_scale(x2, gamma2)
    jax.block_until_ready(out2)
    assert out2.shape == x2.shape and out2.dtype == ref2.dtype
    assert jnp.allclose(out2, ref2, atol=1e-6, rtol=1e-6)

    # Case 3: odd row count -> lane-dense main slab + XLA-handled tail.
    x3 = jax.random.normal(jax.random.PRNGKey(2), (3, 3, 32), dtype=jnp.float32)
    gamma3 = init_values * jnp.ones((32,), dtype=jnp.float32)
    ref3 = x3 * gamma3
    out3 = layer_scale(x3, gamma3)
    jax.block_until_ready(out3)
    assert out3.shape == x3.shape and out3.dtype == ref3.dtype
    assert jnp.allclose(out3, ref3, atol=1e-6, rtol=1e-6)

    # Case 4: bf16 activations — promoted (torch semantics) and no-widen modes.
    x4 = jax.random.normal(jax.random.PRNGKey(3), (B, N, D), dtype=jnp.bfloat16)
    ref4 = x4 * gamma                      # promotes to f32
    out4 = layer_scale(x4, gamma)          # default promote_dtype=True
    jax.block_until_ready(out4)
    assert out4.dtype == ref4.dtype and jnp.allclose(out4, ref4, atol=1e-6, rtol=1e-6)

    ref5 = x4 * gamma.astype(jnp.bfloat16)
    out5 = layer_scale(x4, gamma, promote_dtype=False)   # bf16 -> bf16 path
    jax.block_until_ready(out5)
    assert out5.dtype == jnp.bfloat16
    assert jnp.allclose(out5.astype(jnp.float32), ref5.astype(jnp.float32),
                        atol=1e-3, rtol=1e-2)

    print("KERNEL_OK")
</pallas_src>

<mosaic_0001>
module attributes {stable_mosaic.version = 11 : i64} {
  func.func @_layer_scale_kernel(%arg0: i32, %arg1: memref<4x128xf32, #tpu.memory_space<vmem>>, %arg2: memref<1x128xf32, #tpu.memory_space<vmem>>, %arg3: memref<4x128xf32, #tpu.memory_space<vmem>>) attributes {dimension_semantics = [#tpu.dimension_semantics<parallel>], iteration_bounds = array<i64: 1>, scalar_prefetch = 0 : i64, scratch_operands = 0 : i64, tpu.core_type = #tpu.core_type<tc>, window_params = [{transform_indices = @transform_0, window_bounds = array<i64: 4, 128>}, {pipeline_mode = #tpu.pipeline_mode<synchronous>, transform_indices = @transform_1, window_bounds = array<i64: 1, 128>}, {transform_indices = @transform_2, window_bounds = array<i64: 4, 128>}]} {
    %c0 = arith.constant 0 : index
    %c0_0 = arith.constant 0 : index
    %0 = vector.load %arg1[%c0, %c0_0] : memref<4x128xf32, #tpu.memory_space<vmem>>, vector<4x128xf32>
    %c0_1 = arith.constant 0 : index
    %c0_2 = arith.constant 0 : index
    %1 = vector.load %arg2[%c0_1, %c0_2] : memref<1x128xf32, #tpu.memory_space<vmem>>, vector<1x128xf32>
    %2 = vector.broadcast %1 : vector<1x128xf32> to vector<4x128xf32>
    %3 = arith.mulf %0, %2 : vector<4x128xf32>
    %c0_3 = arith.constant 0 : index
    %c0_4 = arith.constant 0 : index
    %4 = vector.load %arg3[%c0_3, %c0_4] : memref<4x128xf32, #tpu.memory_space<vmem>>, vector<4x128xf32>
    tpu.vector_store %arg3[%c0_3, %c0_4], %3 {strides = array<i32>} : memref<4x128xf32, #tpu.memory_space<vmem>>, vector<4x128xf32>,
    return
  }
  func.func @transform_0(%arg0: i32) -> (i32, i32) {
    %c0_i32 = arith.constant 0 : i32
    %c0_i32_0 = arith.constant 0 : i32
    return %arg0, %c0_i32 : i32, i32
  }
  func.func @transform_1(%arg0: i32) -> (i32, i32) {
    %c0_i32 = arith.constant 0 : i32
    %c0_i32_0 = arith.constant 0 : i32
    %c0_i32_1 = arith.constant 0 : i32
    return %c0_i32, %c0_i32_0 : i32, i32
  }
  func.func @transform_2(%arg0: i32) -> (i32, i32) {
    %c0_i32 = arith.constant 0 : i32
    %c0_i32_0 = arith.constant 0 : i32
    return %arg0, %c0_i32 : i32, i32
  }
}

</mosaic_0001>

<bundles_post_ra>
// kernel: tpu_custom_call.1
= control target key start
LH: loop header
LB: loop body
LE: loop exit
PB: predicated region body
PF: predicated region fallthrough
CT: control target
= control target key end

     0   :  { %7 = vsyncpa [#allocation3], 0  ;;  %s144_s0 = inlined_call_operand.hbm [shape: f32[4,128], index: 0, kind: input, shape index: {}, may-alias: {0,2}]   ;;  %s145_s1 = inlined_call_operand.vmem [shape: f32[1,128], index: 1, kind: input, shape index: {}]   ;;  %s146_s2 = inlined_call_operand.hbm [shape: f32[4,128], index: 2, kind: output, shape index: {}, may-alias: {0,2}]  }
   0x1   :  { %8 = vsyncpa [#allocation4], 0  ;;  %s100_s9 = smov [#allocation2]   ;;  %s52_s13 = scalar_lea.hbm %s144_s0, 64 }
   0x2   :  { %s15_s10 = sshll.u32 %s100_s9, 4  ;;  %p53_p0 = scmp.ne.s32.totalorder %s144_s0, %s52_s13  ;;  %s16_s10 = int_to_ptr.vmem [resolvable:$true] %s15_s10 }
   0x3   :  { %p56_p1 = scmp.lt.u32.totalorder %s52_s13, %s144_s0 }
   0x5   :  { %p58_p2 = pnand %p56_p1, %p53_p0 }
   0x7   :  { %61 = shalt.err (!%p58_p2)
}
   0x8   :  { %s62_s18 = scalar_lea.vmem %s16_s10, 64  ;;  %p67_p4 = scmp.lt.s32.totalorder %s16_s10, %s16_s10 }
   0x9   :  { %p63_p3 = scmp.ne.s32.totalorder %s16_s10, %s62_s18  ;;  %p68_p5 = scmp.lt.s32.totalorder %s62_s18, %s62_s18 }
   0xb   :  { %p69_p6 = por %p68_p5, %p67_p4 }
   0xd   :  { %p70_p7 = pnand %p69_p6, %p63_p3 }
   0xf   :  { %73 = shalt.err (!%p70_p7)
}
  0x10   :  { %18 = dma.hbm_to_vmem [thread:$0]  %s144_s0, 64, %s16_s10, [#allocation3]  }
  0x11   :  { %96 = dma.done.wait [#allocation3], 64  }
  0x12   :  { %97 = vsyncadd [#allocation3], 4294967232  ;;  %s101_s21 = smov [#allocation5]   ;;  %v24_v0 = vld [vmem:[#allocation2] sm:$0xf] }
  0x13   :  { %s40_s22 = sshll.u32 %s101_s21, 4  ;;  %v49_v1 = vld [vmem:[%s145_s1] ss:$0 sm:$0xff]  ;;  %s41_s22 = int_to_ptr.vmem [resolvable:$true] %s40_s22 }
  0x14   :  { %v32_v2 = vmul.f32 %v49_v1, %v24_v0  ;;  %s74_s25 = scalar_lea.vmem %s41_s22, 64  ;;  %p79_p9 = scmp.lt.s32.totalorder %s41_s22, %s41_s22 }
  0x15   :  { %p75_p8 = scmp.ne.s32.totalorder %s41_s22, %s74_s25  ;;  %p80_p10 = scmp.lt.s32.totalorder %s74_s25, %s74_s25 }
  0x16   :  { %33 = vst [vmem:[#allocation5] sm:$0xf] %v32_v2 }
  0x17   :  { %p81_p11 = por %p80_p10, %p79_p9 }
  0x19   :  { %p82_p12 = pnand %p81_p11, %p75_p8 }
  0x1b   :  { %85 = shalt.err (!%p82_p12)
}
  0x1c   :  { %s86_s27 = scalar_lea.hbm %s146_s2, 64 }
  0x1d   :  { %p87_p13 = scmp.ne.s32.totalorder %s146_s2, %s86_s27  ;;  %p90_p0 = scmp.lt.u32.totalorder %s86_s27, %s146_s2 }
  0x1f   :  { %p92_p1 = pnand %p90_p0, %p87_p13 }
  0x21   :  { %95 = shalt.err (!%p92_p1)
}
  0x22   :  { %43 = dma.vmem_to_hbm [thread:$0]  %s41_s22, 64, %s146_s2, [#allocation4]  }
  0x23   :  { %98 = dma.done.wait [#allocation4], 64  }
  0x24   :  { %99 = vsyncadd [#allocation4], 4294967232 }
  0x25   :  { %47 = vsyncpa [#allocation3], 1 }
  0x26   :  { %48 = vsyncpa [#allocation4], 1 }

</bundles_post_ra>
